<compile_context>
chip_gen: v5e
topology: v5e:2x2
jax: 0.10.0
libtpu: 0.0.40
codegen_flags: <defaults>
</compile_context>

<pallas_src>
import functools
import math

import jax
import jax.numpy as jnp
from jax import lax
from jax.experimental import pallas as pl
from jax.experimental.pallas import tpu as pltpu


def _round_up(x, m):
    return ((x + m - 1) // m) * m


def _pick_tile(dim, target, mult=128):
    """Largest multiple of `mult` <= target that divides `dim` (dim % mult == 0)."""
    t = min(target, dim)
    t = max((t // mult) * mult, mult)
    while dim % t != 0:
        t -= mult
    return t


# --------------------------------------------------------------------------
# LayerNorm kernels (torch.nn.LayerNorm semantics: biased var, eps inside sqrt)
# --------------------------------------------------------------------------
def _ln_apply(x, g, b, eps):
    mu = jnp.mean(x, axis=-1, keepdims=True)
    xc = x - mu
    var = jnp.mean(xc * xc, axis=-1, keepdims=True)      # two-pass, robust
    rstd = lax.rsqrt(var + eps)                          # EUP rsqrt
    return xc * rstd * g + b


def _layer_norm_kernel(x_ref, g_ref, b_ref, o_ref, *, eps):
    x = x_ref[...].astype(jnp.float32)
    g = g_ref[...].astype(jnp.float32)
    b = b_ref[...].astype(jnp.float32)
    o_ref[...] = _ln_apply(x, g, b, eps).astype(o_ref.dtype)


def _add_layer_norm_kernel(x_ref, r_ref, g_ref, b_ref, s_ref, o_ref, *, eps):
    # Fused residual add + LayerNorm: emits both (x + r) and LN(x + r).
    s = x_ref[...].astype(jnp.float32) + r_ref[...].astype(jnp.float32)
    s_ref[...] = s.astype(s_ref.dtype)
    g = g_ref[...].astype(jnp.float32)
    b = b_ref[...].astype(jnp.float32)
    o_ref[...] = _ln_apply(s, g, b, eps).astype(o_ref.dtype)


def _ln_row_tile(rows, d):
    # Large sublane-aligned row tile (~1 MiB per input buffer), never ragged.
    target = max(8, (1 << 20) // (4 * d))
    return min(_round_up(rows, 8), _round_up(target, 8), 1024)


def layer_norm(x, gamma, beta, *, eps=1e-5):
    shape = x.shape
    d = shape[-1]
    rows = math.prod(shape[:-1])
    x2 = x.reshape(rows, d)
    tr = _ln_row_tile(rows, d)
    rp = _round_up(rows, tr)
    if rp != rows:
        x2 = jnp.pad(x2, ((0, rp - rows), (0, 0)))
    out = pl.pallas_call(
        functools.partial(_layer_norm_kernel, eps=eps),
        out_shape=jax.ShapeDtypeStruct((rp, d), x.dtype),
        grid_spec=pltpu.PrefetchScalarGridSpec(
            num_scalar_prefetch=0,
            grid=(rp // tr,),
            in_specs=[
                pl.BlockSpec((tr, d), lambda i: (i, 0)),
                pl.BlockSpec((1, d), lambda i: (0, 0)),
                pl.BlockSpec((1, d), lambda i: (0, 0)),
            ],
            out_specs=pl.BlockSpec((tr, d), lambda i: (i, 0)),
        ),
        compiler_params=pltpu.CompilerParams(dimension_semantics=("parallel",)),
    )(x2, gamma.reshape(1, d), beta.reshape(1, d))
    if rp != rows:
        out = out[:rows]
    return out.reshape(shape)


def add_layer_norm(x, r, gamma, beta, *, eps=1e-5):
    """Fused residual add + LayerNorm.  Returns (x + r, LN(x + r))."""
    shape = x.shape
    d = shape[-1]
    rows = math.prod(shape[:-1])
    x2 = x.reshape(rows, d)
    r2 = r.reshape(rows, d)
    tr = _ln_row_tile(rows, d)
    rp = _round_up(rows, tr)
    if rp != rows:
        x2 = jnp.pad(x2, ((0, rp - rows), (0, 0)))
        r2 = jnp.pad(r2, ((0, rp - rows), (0, 0)))
    s, out = pl.pallas_call(
        functools.partial(_add_layer_norm_kernel, eps=eps),
        out_shape=(jax.ShapeDtypeStruct((rp, d), x.dtype),
                   jax.ShapeDtypeStruct((rp, d), x.dtype)),
        grid_spec=pltpu.PrefetchScalarGridSpec(
            num_scalar_prefetch=0,
            grid=(rp // tr,),
            in_specs=[
                pl.BlockSpec((tr, d), lambda i: (i, 0)),
                pl.BlockSpec((tr, d), lambda i: (i, 0)),
                pl.BlockSpec((1, d), lambda i: (0, 0)),
                pl.BlockSpec((1, d), lambda i: (0, 0)),
            ],
            out_specs=[pl.BlockSpec((tr, d), lambda i: (i, 0)),
                       pl.BlockSpec((tr, d), lambda i: (i, 0))],
        ),
        compiler_params=pltpu.CompilerParams(dimension_semantics=("parallel",)),
    )(x2, r2, gamma.reshape(1, d), beta.reshape(1, d))
    if rp != rows:
        s, out = s[:rows], out[:rows]
    return s.reshape(shape), out.reshape(shape)


# --------------------------------------------------------------------------
# Tiled matmul + bias (+ optional fused exact GELU) kernel (nn.Linear)
# --------------------------------------------------------------------------
def _gelu_erf(x):
    # Exact (erf-based) GELU: 0.5*x*(1+erf(x/sqrt(2))), erf via the
    # Abramowitz-Stegun 7.1.26 polynomial (|err| < 1.5e-7), built only from
    # ops Mosaic lowers natively (abs / exp / where / fma / div).
    z = x * jnp.float32(0.7071067811865476)
    az = jnp.abs(z)
    t = 1.0 / (1.0 + jnp.float32(0.3275911) * az)
    poly = t * (jnp.float32(0.254829592)
                + t * (jnp.float32(-0.284496736)
                       + t * (jnp.float32(1.421413741)
                              + t * (jnp.float32(-1.453152027)
                                     + t * jnp.float32(1.061405429)))))
    erf_abs = 1.0 - poly * jnp.exp(-az * az)
    erf_z = jnp.where(z >= 0, erf_abs, -erf_abs)
    return x * (0.5 * (1.0 + erf_z))


def _linear_kernel(x_ref, w_ref, b_ref, o_ref, *, activation):
    # Output (f32) is resident across the k axis -> accumulate directly into it
    # (no separate acc scratch; saves tm*tn*4 bytes of VMEM + a finalize copy).
    @pl.when(pl.program_id(2) == 0)
    def _init():
        o_ref[...] = jnp.zeros_like(o_ref)

    o_ref[...] += jnp.dot(x_ref[...], w_ref[...],
                          preferred_element_type=jnp.float32)

    @pl.when(pl.program_id(2) == pl.num_programs(2) - 1)
    def _finalize():
        r = o_ref[...] + b_ref[...].astype(jnp.float32)
        if activation == "gelu":
            r = _gelu_erf(r)
        o_ref[...] = r.astype(o_ref.dtype)


def linear(x2d, w, b, *, activation=None, tm=256, tn=512, tk=512):
    m, k = x2d.shape
    k2, n = w.shape
    assert k == k2 and x2d.dtype == jnp.float32
    # Pad K / N up to 128 multiples and pick 128-multiple tiles that divide the
    # padded dims (no unpredictable full-dim fallback).
    kp, npad = _round_up(k, 128), _round_up(n, 128)
    tk = _pick_tile(kp, tk)
    tn = _pick_tile(npad, tn)
    tm = min(tm, _round_up(m, 8))
    mp = _round_up(m, tm)
    if (mp, kp) != (m, k):
        x2d = jnp.pad(x2d, ((0, mp - m), (0, kp - k)))
    if (kp, npad) != (k, n):
        w = jnp.pad(w, ((0, kp - k), (0, npad - n)))
    b2 = (jnp.pad(b, (0, npad - n)) if npad != n else b).reshape(1, npad)

    # TODO(synk): on v5e, if the weight stream becomes exposed after the
    # precision fix, raise tk and/or sweep pipeline_mode=pl.Buffered(3) on the
    # weight BlockSpec.
    out = pl.pallas_call(
        functools.partial(_linear_kernel, activation=activation),
        out_shape=jax.ShapeDtypeStruct((mp, npad), jnp.float32),
        grid_spec=pltpu.PrefetchScalarGridSpec(
            num_scalar_prefetch=0,
            grid=(mp // tm, npad // tn, kp // tk),
            in_specs=[
                pl.BlockSpec((tm, tk), lambda i, j, kk: (i, kk)),
                pl.BlockSpec((tk, tn), lambda i, j, kk: (kk, j)),
                pl.BlockSpec((1, tn), lambda i, j, kk: (0, j)),
            ],
            out_specs=pl.BlockSpec((tm, tn), lambda i, j, kk: (i, j)),
        ),
        compiler_params=pltpu.CompilerParams(
            dimension_semantics=("parallel", "parallel", "arbitrary")),
    )(x2d, w, b2)

    if (mp, npad) != (m, n):
        out = out[:m, :n]
    return out


# --------------------------------------------------------------------------
# Fused attention kernel: one batch element (all heads) per grid step.
# q/k/v are read with static lane slices from the (1, S, 3C) qkv block and the
# output is written directly into a lane-dense (1, S, C) block -> no HBM
# transposes around attention.
# --------------------------------------------------------------------------
def _attn_compute(qkv, m, o_ref, *, scale, num_heads, head_dim):
    c = num_heads * head_dim
    for h in range(num_heads):                       # unrolled: all heads per grid step
        lo = h * head_dim
        q = qkv[:, lo:lo + head_dim] * scale         # fold scale into q (S*Dh muls)
        k = qkv[:, c + lo:c + lo + head_dim]
        v = qkv[:, 2 * c + lo:2 * c + lo + head_dim]
        s = lax.dot_general(q, k, (((1,), (1,)), ((), ())),
                            preferred_element_type=jnp.float32)   # (S, S)
        if m is not None:
            s = jnp.where(m > 0, jnp.float32(-1e7), s)            # mask padded keys
        s_max = jnp.max(s, axis=-1, keepdims=True)
        p = jnp.exp(s - s_max)
        denom = jnp.sum(p, axis=-1, keepdims=True)
        o = jnp.dot(p, v, preferred_element_type=jnp.float32)
        o_ref[0, :, lo:lo + head_dim] = (
            o * pl.reciprocal(denom, approx=True)).astype(o_ref.dtype)


def _attention_kernel(qkv_ref, o_ref, *, scale, num_heads, head_dim):
    _attn_compute(qkv_ref[0].astype(jnp.float32), None, o_ref,
                  scale=scale, num_heads=num_heads, head_dim=head_dim)


def _attention_kernel_masked(mask_ref, qkv_ref, o_ref, *, scale, num_heads, head_dim):
    _attn_compute(qkv_ref[0].astype(jnp.float32), mask_ref[0], o_ref,
                  scale=scale, num_heads=num_heads, head_dim=head_dim)


def attention_core(qkv, mask, *, scale, num_heads, head_dim):
    # qkv: (B, S, 3C); mask: (B, 1, S) or None; returns (B, S, C).
    b, s, threec = qkv.shape
    c = num_heads * head_dim
    assert threec == 3 * c
    if mask is None:
        kern = functools.partial(_attention_kernel, scale=scale,
                                 num_heads=num_heads, head_dim=head_dim)
        in_specs = [pl.BlockSpec((1, s, threec), lambda i: (i, 0, 0))]
        operands = (qkv,)
    else:
        kern = functools.partial(_attention_kernel_masked, scale=scale,
                                 num_heads=num_heads, head_dim=head_dim)
        in_specs = [pl.BlockSpec((1, 1, s), lambda i: (i, 0, 0)),
                    pl.BlockSpec((1, s, threec), lambda i: (i, 0, 0))]
        operands = (mask, qkv)
    return pl.pallas_call(
        kern,
        out_shape=jax.ShapeDtypeStruct((b, s, c), qkv.dtype),
        grid_spec=pltpu.PrefetchScalarGridSpec(
            num_scalar_prefetch=0,
            grid=(b,),
            in_specs=in_specs,
            out_specs=pl.BlockSpec((1, s, c), lambda i: (i, 0, 0)),
        ),
        compiler_params=pltpu.CompilerParams(dimension_semantics=("parallel",)),
    )(*operands)


# --------------------------------------------------------------------------
# Module-level forward (orchestration of the Pallas kernels)
# --------------------------------------------------------------------------
def attention_forward(x, p, num_heads, padding_mask):
    b, n, c = x.shape
    dh = c // num_heads
    scale = dh ** (-0.5)
    qkv = linear(x.reshape(b * n, c), p["qkv_w"], p["qkv_b"])       # (B*N, 3C)
    qkv = qkv.reshape(b, n, 3 * c)                                  # free (row-major)
    mask = None
    if padding_mask is not None:
        mask = padding_mask.astype(jnp.float32).reshape(b, 1, n)
    o = attention_core(qkv, mask, scale=scale, num_heads=num_heads, head_dim=dh)
    o = linear(o.reshape(b * n, c), p["fc_w"], p["fc_b"]).reshape(b, n, c)
    return o


def mlp_forward(x, p):
    b, n, c = x.shape
    h = linear(x.reshape(b * n, c), p["fc1_w"], p["fc1_b"], activation="gelu")
    h = linear(h, p["fc2_w"], p["fc2_b"])
    return h.reshape(b, n, c)


def transformer_forward(x, params, num_heads, padding_mask=None):
    # att_drop = drop = drop_path = 0 -> Dropout / DropPath are identities.
    res = x
    pending = None          # MLP output of the previous block, not yet added
    for p in params["blocks"]:
        if pending is None:
            h = layer_norm(res, p["ln1_g"], p["ln1_b"])
        else:
            res, h = add_layer_norm(res, pending, p["ln1_g"], p["ln1_b"])
        a = attention_forward(h, p, num_heads, padding_mask)
        res, h = add_layer_norm(res, a, p["ln2_g"], p["ln2_b"])
        pending = mlp_forward(h, p)
    if pending is None:
        return layer_norm(res, params["ln_g"], params["ln_b"])
    _, out = add_layer_norm(res, pending, params["ln_g"], params["ln_b"])
    return out


# --------------------------------------------------------------------------
# Parameter init (deterministic, xavier-uniform-like for the linears)
# --------------------------------------------------------------------------
def init_transformer_params(key, emb_dim, depth, num_heads):
    def dense(k, fan_in, fan_out):
        limit = math.sqrt(6.0 / (fan_in + fan_out))
        w = jax.random.uniform(k, (fan_in, fan_out), jnp.float32, -limit, limit)
        b = jnp.zeros((fan_out,), jnp.float32)
        return w, b

    keys = jax.random.split(key, depth)
    blocks = []
    for i in range(depth):
        k1, k2, k3, k4 = jax.random.split(keys[i], 4)
        qkv_w, qkv_b = dense(k1, emb_dim, 3 * emb_dim)
        fc_w, fc_b = dense(k2, emb_dim, emb_dim)
        fc1_w, fc1_b = dense(k3, emb_dim, 4 * emb_dim)
        fc2_w, fc2_b = dense(k4, 4 * emb_dim, emb_dim)
        blocks.append(dict(
            ln1_g=jnp.ones((emb_dim,), jnp.float32),
            ln1_b=jnp.zeros((emb_dim,), jnp.float32),
            qkv_w=qkv_w, qkv_b=qkv_b, fc_w=fc_w, fc_b=fc_b,
            ln2_g=jnp.ones((emb_dim,), jnp.float32),
            ln2_b=jnp.zeros((emb_dim,), jnp.float32),
            fc1_w=fc1_w, fc1_b=fc1_b, fc2_w=fc2_w, fc2_b=fc2_b,
        ))
    return dict(blocks=blocks,
                ln_g=jnp.ones((emb_dim,), jnp.float32),
                ln_b=jnp.zeros((emb_dim,), jnp.float32))


# --------------------------------------------------------------------------
# Pure-JAX reference mirroring the PyTorch forward (default matmul precision,
# same as the kernels)
# --------------------------------------------------------------------------
def _reference_transformer(x, params, num_heads, padding_mask=None, eps=1e-5):
    def ln(y, g, b):
        mu = jnp.mean(y, axis=-1, keepdims=True)
        var = jnp.mean((y - mu) ** 2, axis=-1, keepdims=True)
        return (y - mu) / jnp.sqrt(var + eps) * g + b

    def attn(y, p):
        b_, n_, c_ = y.shape
        dh = c_ // num_heads
        qkv = jnp.einsum("bnc,cm->bnm", y, p["qkv_w"]) + p["qkv_b"]
        qkv = qkv.reshape(b_, n_, 3, num_heads, dh).transpose(2, 0, 3, 1, 4)
        q, k, v = qkv[0], qkv[1], qkv[2]
        att = jnp.einsum("bhqd,bhkd->bhqk", q, k) * (dh ** -0.5)
        if padding_mask is not None:
            m = padding_mask[:, None, None, :]
            att = jnp.where(m > 0, -1e7, att)
        att = jax.nn.softmax(att, axis=-1)
        o = jnp.einsum("bhqk,bhkd->bhqd", att, v)
        o = o.transpose(0, 2, 1, 3).reshape(b_, n_, c_)
        return jnp.einsum("bnc,cm->bnm", o, p["fc_w"]) + p["fc_b"]

    def mlp(y, p):
        h = jnp.einsum("bnc,cm->bnm", y, p["fc1_w"]) + p["fc1_b"]
        h = jax.nn.gelu(h, approximate=False)
        return jnp.einsum("bnc,cm->bnm", h, p["fc2_w"]) + p["fc2_b"]

    for p in params["blocks"]:
        h = ln(x, p["ln1_g"], p["ln1_b"])
        x = x + attn(h, p)
        h = ln(x, p["ln2_g"], p["ln2_b"])
        x = x + mlp(h, p)
    return ln(x, params["ln_g"], params["ln_b"])


if __name__ == "__main__":
    key = jax.random.PRNGKey(0)
    batch, seq, emb_dim, depth, num_heads = 2, 16, 128, 2, 4

    kx, kp = jax.random.split(key)
    x = jax.random.normal(kx, (batch, seq, emb_dim), dtype=jnp.float32)
    params = init_transformer_params(kp, emb_dim, depth, num_heads)

    # Unmasked path.
    out = jax.block_until_ready(transformer_forward(x, params, num_heads, padding_mask=None))
    ref = _reference_transformer(x, params, num_heads, padding_mask=None)
    assert out.shape == x.shape
    md = float(jnp.max(jnp.abs(out - ref)))
    assert bool(jnp.allclose(out, ref, atol=2e-3, rtol=2e-3)), f"max diff {md}"

    # Masked path (last 5 keys of batch element 1 are padding).
    pm = jnp.zeros((batch, seq), jnp.float32).at[1, 11:].set(1.0)
    out_m = jax.block_until_ready(transformer_forward(x, params, num_heads, padding_mask=pm))
    ref_m = _reference_transformer(x, params, num_heads, padding_mask=pm)
    md_m = float(jnp.max(jnp.abs(out_m - ref_m)))
    assert bool(jnp.allclose(out_m, ref_m, atol=2e-3, rtol=2e-3)), f"max diff {md_m}"

    print("KERNEL_OK")
</pallas_src>

<mosaic_0001>
module attributes {stable_mosaic.version = 11 : i64} {
  func.func @_layer_norm_kernel(%arg0: i32, %arg1: memref<32x128xf32, #tpu.memory_space<vmem>>, %arg2: memref<1x128xf32, #tpu.memory_space<vmem>>, %arg3: memref<1x128xf32, #tpu.memory_space<vmem>>, %arg4: memref<32x128xf32, #tpu.memory_space<vmem>>) attributes {dimension_semantics = [#tpu.dimension_semantics<parallel>], iteration_bounds = array<i64: 1>, scalar_prefetch = 0 : i64, scratch_operands = 0 : i64, tpu.core_type = #tpu.core_type<tc>, window_params = [{transform_indices = @transform_0, window_bounds = array<i64: 32, 128>}, {pipeline_mode = #tpu.pipeline_mode<synchronous>, transform_indices = @transform_1, window_bounds = array<i64: 1, 128>}, {pipeline_mode = #tpu.pipeline_mode<synchronous>, transform_indices = @transform_2, window_bounds = array<i64: 1, 128>}, {transform_indices = @transform_3, window_bounds = array<i64: 32, 128>}]} {
    %c0 = arith.constant 0 : index
    %c0_0 = arith.constant 0 : index
    %0 = vector.load %arg1[%c0, %c0_0] : memref<32x128xf32, #tpu.memory_space<vmem>>, vector<32x128xf32>
    %c0_1 = arith.constant 0 : index
    %c0_2 = arith.constant 0 : index
    %1 = vector.load %arg2[%c0_1, %c0_2] : memref<1x128xf32, #tpu.memory_space<vmem>>, vector<1x128xf32>
    %c0_3 = arith.constant 0 : index
    %c0_4 = arith.constant 0 : index
    %2 = vector.load %arg3[%c0_3, %c0_4] : memref<1x128xf32, #tpu.memory_space<vmem>>, vector<1x128xf32>
    %cst = arith.constant dense<0.000000e+00> : vector<32xf32>
    %3 = vector.multi_reduction <add>, %0, %cst [1] : vector<32x128xf32> to vector<32xf32>
    %4 = vector.shape_cast %3 : vector<32xf32> to vector<32x1xf32>
    %cst_5 = arith.constant 1.280000e+02 : f32
    %5 = vector.broadcast %cst_5 : f32 to vector<32x1xf32>
    %6 = arith.divf %4, %5 : vector<32x1xf32>
    %7 = vector.broadcast %6 : vector<32x1xf32> to vector<32x128xf32>
    %8 = arith.subf %0, %7 : vector<32x128xf32>
    %9 = arith.mulf %8, %8 : vector<32x128xf32>
    %cst_6 = arith.constant dense<0.000000e+00> : vector<32xf32>
    %10 = vector.multi_reduction <add>, %9, %cst_6 [1] : vector<32x128xf32> to vector<32xf32>
    %11 = vector.shape_cast %10 : vector<32xf32> to vector<32x1xf32>
    %cst_7 = arith.constant 1.280000e+02 : f32
    %12 = vector.broadcast %cst_7 : f32 to vector<32x1xf32>
    %13 = arith.divf %11, %12 : vector<32x1xf32>
    %cst_8 = arith.constant 9.99999974E-6 : f32
    %14 = vector.broadcast %cst_8 : f32 to vector<32x1xf32>
    %15 = arith.addf %13, %14 : vector<32x1xf32>
    %16 = math.rsqrt %15 : vector<32x1xf32>
    %17 = vector.broadcast %16 : vector<32x1xf32> to vector<32x128xf32>
    %18 = arith.mulf %8, %17 : vector<32x128xf32>
    %19 = vector.broadcast %1 : vector<1x128xf32> to vector<32x128xf32>
    %20 = arith.mulf %18, %19 : vector<32x128xf32>
    %21 = vector.broadcast %2 : vector<1x128xf32> to vector<32x128xf32>
    %22 = arith.addf %20, %21 : vector<32x128xf32>
    %c0_9 = arith.constant 0 : index
    %c0_10 = arith.constant 0 : index
    %23 = vector.load %arg4[%c0_9, %c0_10] : memref<32x128xf32, #tpu.memory_space<vmem>>, vector<32x128xf32>
    tpu.vector_store %arg4[%c0_9, %c0_10], %22 {strides = array<i32>} : memref<32x128xf32, #tpu.memory_space<vmem>>, vector<32x128xf32>,
    return
  }
  func.func @transform_0(%arg0: i32) -> (i32, i32) {
    %c0_i32 = arith.constant 0 : i32
    %c0_i32_0 = arith.constant 0 : i32
    return %arg0, %c0_i32 : i32, i32
  }
  func.func @transform_1(%arg0: i32) -> (i32, i32) {
    %c0_i32 = arith.constant 0 : i32
    %c0_i32_0 = arith.constant 0 : i32
    %c0_i32_1 = arith.constant 0 : i32
    return %c0_i32, %c0_i32_0 : i32, i32
  }
  func.func @transform_2(%arg0: i32) -> (i32, i32) {
    %c0_i32 = arith.constant 0 : i32
    %c0_i32_0 = arith.constant 0 : i32
    %c0_i32_1 = arith.constant 0 : i32
    return %c0_i32, %c0_i32_0 : i32, i32
  }
  func.func @transform_3(%arg0: i32) -> (i32, i32) {
    %c0_i32 = arith.constant 0 : i32
    %c0_i32_0 = arith.constant 0 : i32
    return %arg0, %c0_i32 : i32, i32
  }
}

</mosaic_0001>

<bundles_post_ra>
// kernel: tpu_custom_call.1
= control target key start
LH: loop header
LB: loop body
LE: loop exit
PB: predicated region body
PF: predicated region fallthrough
CT: control target
= control target key end

     0   :  { %8 = vsyncpa [#allocation3], 0  ;;  %s326_s0 = inlined_call_operand.hbm [shape: f32[32,128], index: 0, kind: input, shape index: {}]   ;;  %s327_s1 = inlined_call_operand.hbm [shape: f32[1,128], index: 1, kind: input, shape index: {}]   ;;  %s328_s2 = inlined_call_operand.vmem [shape: f32[1,128], index: 2, kind: input, shape index: {}]   ;;  %s329_s3 = inlined_call_operand.hbm [shape: f32[32,128], index: 3, kind: output, shape index: {}]  }
   0x1   :  { %9 = vsyncpa [#allocation6], 0 }
   0x2   :  { %10 = vsyncpa [#allocation4], 0  ;;  %s15_s14 = sshll.u32 %s326_s0, 4  ;;  %s272_s15 = smov [#allocation2]   ;;  %s16_s14 = int_to_ptr.hbm [resolvable:$true] %s15_s14 }
   0x3   :  { %s17_s16 = sshll.u32 %s272_s15, 4  ;;  %s29_s19 = sshll.u32 %s327_s1, 4  ;;  %s18_s16 = int_to_ptr.vmem [resolvable:$true] %s17_s16  ;;  %s30_s19 = int_to_ptr.hbm [resolvable:$true] %s29_s19 }
   0x4   :  { %s273_s20 = smov 128   ;;  %s274_s21 = smov 8  }
   0x5   :  { %23 = dma.hbm_to_vmem [thread:$0]  %s16_s14, 512, %s18_s16, [#allocation3], %s273_s20, %s273_s20, %s274_s21  }
   0x6   :  { %s275_s22 = smov [#allocation5]  }
   0x7   :  { %s31_s23 = sshll.u32 %s275_s22, 4  ;;  %s32_s23 = int_to_ptr.vmem [resolvable:$true] %s31_s23 }
   0x8   :  { %34 = dma.hbm_to_vmem [thread:$0]  %s30_s19, 16, %s32_s23, [#allocation6]  }
   0x9   :  { %266 = dma.done.wait [#allocation3], 512  }
   0xa   :  { %267 = vsyncadd [#allocation3], 4294966784 }
   0xb   :  { %268 = dma.done.wait [#allocation6], 16  }
   0xc   :  { %269 = vsyncadd [#allocation6], 4294967280  ;;  %v47_v0 = vld [vmem:[#allocation2 + $0x10] sm:$0xff]  ;;  %v45_v1 = vld [vmem:[#allocation2] sm:$0xff]  ;;  %v276_v4 = vmov 128.0   ;;  %s162_s27 = sshll.u32 %s329_s3, 4  ;;  %s163_s27 = int_to_ptr.hbm [resolvable:$true] %s162_s27 }
   0xd   :  { %55 = vadd.xlane.f32.xlu1 %v47_v0  ;;  %51 = vadd.xlane.f32.xlu0 %v45_v1  ;;  %v48_v2 = vld [vmem:[#allocation2 + $0x18] sm:$0xff]  ;;  %v46_v3 = vld [vmem:[#allocation2 + $0x8] sm:$0xff]  ;;  %184 = vrcp.f32 %v276_v4  ;;  %v182_v53 = vld [vmem:[#allocation5] ss:$0 sm:$0xff] }
   0xe   :  { %v183_v61 = vld [vmem:[%s328_s2] ss:$0 sm:$0xff]  ;;  %s277_s2 = smov [#allocation7]  }
   0xf   :  { %s160_s24 = sshll.u32 %s277_s2, 4  ;;  %s161_s24 = int_to_ptr.vmem [resolvable:$true] %s160_s24 }
  0x13   :  { %v185_v5 = vpop.eup %184 }
  0x14   :  { %v60_v6 = vmul.f32 128.0, %v185_v5  ;;  %vm64_vm0 = vweird.f32 %v185_v5 }
  0x15   :  { %57 = vadd.xlane.f32.xlu1 %v48_v2  ;;  %53 = vadd.xlane.f32.xlu0 %v46_v3 }
  0x16   :  { %v61_v7 = vsub.f32 1.0, %v60_v6 }
  0x18   :  { %v62_v8 = vmul.f32 %v185_v5, %v61_v7 }
  0x1a   :  { %v63_v9 = vadd.f32 %v185_v5, %v62_v8 }
  0x1c   :  { %v65_v10 = vsel %vm64_vm0, %v185_v5, %v63_v9 }
  0x80   :  { %v56_v11 = vpop.xlane.xlu1 %55  ;;  %v52_v12 = vpop.xlane.xlu0 %51 }
  0x81   :  { %v68_v13 = vmul.f32 %v65_v10, %v56_v11  ;;  %v66_v14 = vmul.f32 %v65_v10, %v52_v12 }
  0x83   :  { %v72_v15 = vsub.f32 %v47_v0, %v68_v13  ;;  %v70_v16 = vsub.f32 %v45_v1, %v66_v14 }
  0x85   :  { %v76_v17 = vmul.f32 %v72_v15, %v72_v15  ;;  %v74_v18 = vmul.f32 %v70_v16, %v70_v16 }
  0x87   :  { %82 = vadd.xlane.f32.xlu0 %v76_v17  ;;  %78 = vadd.xlane.f32.xlu2 %v74_v18 }
  0x88   :  { %v58_v19 = vpop.xlane.xlu1 %57  ;;  %v54_v20 = vpop.xlane.xlu0 %53 }
  0x89   :  { %v69_v21 = vmul.f32 %v65_v10, %v58_v19  ;;  %v67_v22 = vmul.f32 %v65_v10, %v54_v20 }
  0x8b   :  { %v307_v23 = vsub.f32 %v48_v2, %v69_v21  ;;  %v309_v24 = vsub.f32 %v46_v3, %v67_v22 }
  0x8d   :  { %v77_v25 = vmul.f32 %v307_v23, %v307_v23  ;;  %v75_v26 = vmul.f32 %v309_v24, %v309_v24 }
  0x8f   :  { %84 = vadd.xlane.f32.xlu1 %v77_v25  ;;  %80 = vadd.xlane.f32.xlu2 %v75_v26 }
  0xfa   :  { %v79_v27 = vpop.xlane.xlu2 %78  ;;  %v83_v28 = vpop.xlane.xlu0 %82 }
  0xfb   :  { %v86_v29 = vmul.f32 %v79_v27, %v65_v10  ;;  %v88_v30 = vmul.f32 %v83_v28, %v65_v10 }
  0xfd   :  { %v90_v31 = vadd.f32 1e-05, %v86_v29  ;;  %v92_v32 = vadd.f32 1e-05, %v88_v30 }
  0xff   :  { %186 = vrsqrt.f32 %v90_v31  ;;  %vm100_vm3 = vweird.f32 %v90_v31  ;;  %vm120_vm5 = vweird.f32 %v92_v32 }
 0x100   :  { %188 = vrsqrt.f32 %v92_v32 }
 0x102   :  { %v85_v33 = vpop.xlane.xlu1 %84  ;;  %v81_v34 = vpop.xlane.xlu2 %80 }
 0x103   :  { %v89_v35 = vmul.f32 %v85_v33, %v65_v10  ;;  %v87_v36 = vmul.f32 %v81_v34, %v65_v10 }
 0x105   :  { %v187_v37 = vpop.eup %186  ;;  %v93_v38 = vadd.f32 1e-05, %v89_v35  ;;  %v91_v39 = vadd.f32 1e-05, %v87_v36 }
 0x106   :  { %v189_v40 = vpop.eup %188  ;;  %v95_v41 = vmul.f32 %v187_v37, %v90_v31  ;;  %vm101_vm1 = vweird.f32 %v187_v37 }
 0x107   :  { %v115_v42 = vmul.f32 %v189_v40, %v92_v32  ;;  %190 = vrsqrt.f32 %v93_v38  ;;  %vm121_vm2 = vweird.f32 %v189_v40  ;;  %vm102_vm4 = vmor %vm100_vm3, %vm101_vm1  ;;  %vm130_vm9 = vweird.f32 %v93_v38 }
 0x108   :  { %v96_v43 = vmul.f32 %v187_v37, %v95_v41  ;;  %192 = vrsqrt.f32 %v91_v39  ;;  %vm122_vm6 = vmor %vm120_vm5, %vm121_vm2  ;;  %vm110_vm11 = vweird.f32 %v91_v39 }
 0x109   :  { %v116_v44 = vmul.f32 %v189_v40, %v115_v42 }
 0x10a   :  { %v97_v45 = vmul.f32 0.5, %v96_v43 }
 0x10b   :  { %v117_v46 = vmul.f32 0.5, %v116_v44 }
 0x10c   :  { %v98_v47 = vsub.f32 1.5, %v97_v45 }
 0x10d   :  { %v191_v48 = vpop.eup %190  ;;  %v118_v49 = vsub.f32 1.5, %v117_v46 }
 0x10e   :  { %v193_v50 = vpop.eup %192  ;;  %v99_v51 = vmul.f32 %v187_v37, %v98_v47  ;;  %v125_v52 = vmul.f32 %v191_v48, %v93_v38  ;;  %vm131_vm7 = vweird.f32 %v191_v48 }
 0x10f   :  { %v119_v54 = vmul.f32 %v189_v40, %v118_v49  ;;  %v105_v55 = vmul.f32 %v193_v50, %v91_v39  ;;  %vm111_vm8 = vweird.f32 %v193_v50  ;;  %vm132_vm10 = vmor %vm130_vm9, %vm131_vm7 }
 0x110   :  { %v103_v56 = vsel %vm102_vm4, %v187_v37, %v99_v51  ;;  %v126_v57 = vmul.f32 %v191_v48, %v125_v52  ;;  %vm112_vm12 = vmor %vm110_vm11, %vm111_vm8 }
 0x111   :  { %v134_v58 = vmul.f32 %v103_v56, %v70_v16  ;;  %v123_v59 = vsel %vm122_vm6, %v189_v40, %v119_v54  ;;  %v106_v60 = vmul.f32 %v193_v50, %v105_v55 }
 0x112   :  { %v136_v62 = vmul.f32 %v123_v59, %v72_v15  ;;  %v127_v63 = vmul.f32 0.5, %v126_v57 }
 0x113   :  { %v141_v0 = vmul.f32 %v182_v53, %v134_v58  ;;  %v107_v1 = vmul.f32 0.5, %v106_v60 }
 0x114   :  { %v143_v2 = vmul.f32 %v182_v53, %v136_v62  ;;  %v128_v3 = vsub.f32 1.5, %v127_v63 }
 0x115   :  { %v108_v4 = vsub.f32 1.5, %v107_v1  ;;  %v148_v5 = vadd.f32 %v183_v61, %v141_v0 }
 0x116   :  { %v129_v6 = vmul.f32 %v191_v48, %v128_v3  ;;  %v150_v7 = vadd.f32 %v183_v61, %v143_v2 }
 0x117   :  { %v109_v8 = vmul.f32 %v193_v50, %v108_v4  ;;  %152 = vst [vmem:[#allocation7] sm:$0xff] %v148_v5 }
 0x118   :  { %v133_v9 = vsel %vm132_vm10, %v191_v48, %v129_v6  ;;  %154 = vst [vmem:[#allocation7 + $0x10] sm:$0xff] %v150_v7 }
 0x119   :  { %v137_v10 = vmul.f32 %v133_v9, %v307_v23  ;;  %v113_v11 = vsel %vm112_vm12, %v193_v50, %v109_v8 }
 0x11a   :  { %v135_v12 = vmul.f32 %v113_v11, %v309_v24 }
 0x11b   :  { %v144_v13 = vmul.f32 %v182_v53, %v137_v10 }
 0x11c   :  { %v142_v14 = vmul.f32 %v182_v53, %v135_v12 }
 0x11d   :  { %v151_v15 = vadd.f32 %v183_v61, %v144_v13 }
 0x11e   :  { %v149_v16 = vadd.f32 %v183_v61, %v142_v14 }
 0x11f   :  { %155 = vst [vmem:[#allocation7 + $0x18] sm:$0xff] %v151_v15 }
 0x120   :  { %153 = vst [vmem:[#allocation7 + $0x8] sm:$0xff] %v149_v16 }
 0x121   :  { %168 = dma.vmem_to_hbm [thread:$0]  %s161_s24, 512, %s163_s27, [#allocation4], %s273_s20, %s273_s20, %s274_s21  }
 0x122   :  { %270 = dma.done.wait [#allocation4], 512  }
 0x123   :  { %271 = vsyncadd [#allocation4], 4294966784 }
 0x124   :  { %173 = vsyncpa [#allocation3], 1 }
 0x125   :  { %174 = vsyncpa [#allocation6], 1 }
 0x126   :  { %175 = vsyncpa [#allocation4], 1 }

</bundles_post_ra>
